<compile_context>
chip_gen: v5e
topology: v5e:2x2
jax: 0.10.0
libtpu: 0.0.40
codegen_flags: <defaults>
</compile_context>

<pallas_src>
import functools

import jax
import jax.numpy as jnp
import numpy as np
from jax.experimental import pallas as pl
from jax.experimental.pallas import tpu as pltpu

_SQRT2_INV = 0.7071067811865476

# Matmul operand dtype.  bf16 roughly doubles MXU throughput on v6e/v7x (accumulation stays
# f32 via preferred_element_type) but eats into the 2e-3 verification tolerance on the
# K = 9*(C+1) contraction, so the shipped default stays exact f32.
_MM_DTYPE = jnp.float32


def _erf(x):
    # Abramowitz & Stegun 7.1.26 rational approximation, |abs err| < 1.5e-7.
    a1, a2, a3, a4, a5 = 0.254829592, -0.284496736, 1.421413741, -1.453152027, 1.061405429
    p = 0.3275911
    sgn = jnp.where(x >= 0.0, 1.0, -1.0)
    ax = jnp.abs(x)
    # EUP reciprocal (approx): the transcendental slot is otherwise idle under MXU/VPU work.
    t = pl.reciprocal(1.0 + p * ax, approx=True)
    poly = ((((a5 * t + a4) * t + a3) * t + a2) * t + a1) * t
    return sgn * (1.0 - poly * jnp.exp(-ax * ax))


def _gelu_exact(x):
    # PyTorch F.gelu default (approximate='none'): 0.5*x*(1+erf(x/sqrt(2)))
    return 0.5 * x * (1.0 + _erf(x * _SQRT2_INV))


def gdfn_kernel(x_ref, mask_ref, w_ref, b_ref, wc_ref, bc_ref, o_ref, *, H, W):
    HW = H * W
    C4 = b_ref.shape[0] // 2

    # x block is (1, C, H*W): channels on sublanes, spatial on the 128-lane axis (lane-dense).
    x = x_ref[0].astype(jnp.float32)                                    # (C, HW)

    # LayerNorm over spatial dims per (n, c) — matches F.layer_norm(x, x.shape[-2:]).
    mean = jnp.mean(x, axis=1, keepdims=True)                           # (C, 1)
    var = jnp.mean(jnp.square(x - mean), axis=1, keepdims=True)         # (C, 1)
    xn = (x - mean) * jax.lax.rsqrt(var + 1e-5)                         # (C, HW)

    # Bias-augmented input: the constant-ones row carries the composed 1x1 bias, so border
    # masking zeroes it exactly like the zero-padded conv input would be.
    xa = jnp.concatenate([xn, jnp.ones((1, HW), jnp.float32)], axis=0)  # (C+1, HW)

    # im2col of the normalized input: each 3x3 tap is one lane roll (XLU slot) times a
    # host-precomputed border mask (VPU) — no padded scratch, no per-tap integer compares.
    cols = []
    m = 0
    for ky in range(3):
        for kx in range(3):
            off = (ky - 1) * W + (kx - 1)
            if off == 0:
                cols.append(xa)
                continue
            shifted = pltpu.roll(xa, shift=(-off) % HW, axis=1)         # shifted[p] = xa[p+off]
            cols.append(shifted * mask_ref[m:m + 1, :])
            m += 1
    col = jnp.concatenate(cols, axis=0)                                 # (9*(C+1), HW)

    # Both branches' composed conv1x1∘conv3x3 as ONE dense matmul (no structural zeros).
    acc = jnp.dot(w_ref[...].astype(_MM_DTYPE), col.astype(_MM_DTYPE),
                  preferred_element_type=jnp.float32) + b_ref[...]      # (2*C4, HW)

    # Gated FFN: gelu(branch1) * branch2, then 1x1 projection + residual.
    z = _gelu_exact(acc[:C4]) * acc[C4:]                                # (C4, HW)
    out = jnp.dot(wc_ref[...].astype(_MM_DTYPE), z.astype(_MM_DTYPE),
                  preferred_element_type=jnp.float32) + bc_ref[...]     # (C, HW)
    o_ref[0] = (x + out).astype(o_ref.dtype)


def pack_gdfn_params(p):
    """Compose Conv1x1 (weight + bias) into the Conv3x3 of each branch.  Done ONCE on host
    in float64, so the per-call kernel sees a single dense (2*C4, 9*(C+1)) weight."""
    w1a = np.asarray(p["w1a"], np.float64); b1a = np.asarray(p["b1a"], np.float64)
    w1b = np.asarray(p["w1b"], np.float64); b1b = np.asarray(p["b1b"], np.float64)
    w2a = np.asarray(p["w2a"], np.float64); b2a = np.asarray(p["b2a"], np.float64)
    w2b = np.asarray(p["w2b"], np.float64); b2b = np.asarray(p["b2b"], np.float64)
    C4, C = w1a.shape[0], w1a.shape[1]
    # Bias-augmented 1x1 weights: [W | b]  ->  (C4, C+1).
    wa1 = np.concatenate([w1a.reshape(C4, C), b1a.reshape(C4, 1)], axis=1)
    wa2 = np.concatenate([w2a.reshape(C4, C), b2a.reshape(C4, 1)], axis=1)
    taps = []
    for ky in range(3):
        for kx in range(3):
            top = w1b[:, :, ky, kx] @ wa1                               # (C4, C+1)
            bot = w2b[:, :, ky, kx] @ wa2                               # (C4, C+1)
            taps.append(np.concatenate([top, bot], axis=0))             # (2*C4, C+1)
    w_eff = np.concatenate(taps, axis=1).astype(np.float32)             # (2*C4, 9*(C+1))
    b_eff = np.concatenate([b1b, b2b]).reshape(2 * C4, 1).astype(np.float32)
    wc = np.asarray(p["wc"], np.float32).reshape(-1, C4)                # (C, C4)
    bc = np.asarray(p["bc"], np.float32).reshape(-1, 1)                 # (C, 1)
    return {"w_eff": jnp.asarray(w_eff), "b_eff": jnp.asarray(b_eff),
            "wc": jnp.asarray(wc), "bc": jnp.asarray(bc)}


def _border_masks(H, W):
    """Float masks (8, H*W): for each non-center 3x3 tap, 1 where the shifted source pixel
    is in-bounds (i.e. where zero-padding does NOT apply)."""
    hh = np.repeat(np.arange(H), W)
    ww = np.tile(np.arange(W), H)
    masks = []
    for ky in range(3):
        for kx in range(3):
            dy, dx = ky - 1, kx - 1
            if dy == 0 and dx == 0:
                continue
            valid = (hh + dy >= 0) & (hh + dy < H) & (ww + dx >= 0) & (ww + dx < W)
            masks.append(valid.astype(np.float32))
    return np.stack(masks, axis=0)                                       # (8, HW)


def gdfn_pallas(x_nchw, packed):
    N, C, H, W = x_nchw.shape
    HW = H * W
    x = x_nchw.reshape(N, C, HW)                      # channel-first flatten, no transpose
    masks = jnp.asarray(_border_masks(H, W))          # (8, HW) constant (fetched once)

    kern = functools.partial(gdfn_kernel, H=H, W=W)

    def const_spec(a):
        return pl.BlockSpec(a.shape, lambda n, _nd=a.ndim: (0,) * _nd)

    operands = (x, masks, packed["w_eff"], packed["b_eff"], packed["wc"], packed["bc"])
    in_specs = [pl.BlockSpec((1, C, HW), lambda n: (n, 0, 0))] + \
               [const_spec(a) for a in operands[1:]]

    out = pl.pallas_call(
        kern,
        out_shape=jax.ShapeDtypeStruct((N, C, HW), x.dtype),
        grid_spec=pltpu.PrefetchScalarGridSpec(
            num_scalar_prefetch=0,
            grid=(N,),                                # one image per grid step
            in_specs=in_specs,
            out_specs=pl.BlockSpec((1, C, HW), lambda n: (n, 0, 0)),
        ),
        compiler_params=pltpu.CompilerParams(
            dimension_semantics=("parallel",),        # batch axis independent across steps
            vmem_limit_bytes=48 * 1024 * 1024,        # > v6e/v5e scoped default, < v7x physical
        ),
    )(*operands)
    return out.reshape(N, C, H, W)


def gdfn_reference(x, p):
    # Pure-JAX reference mirroring the PyTorch forward (NCHW).
    mean = jnp.mean(x, axis=(2, 3), keepdims=True)
    var = jnp.mean(jnp.square(x - mean), axis=(2, 3), keepdims=True)
    xn = (x - mean) / jnp.sqrt(var + 1e-5)

    def conv(y, w, b, pad):
        o = jax.lax.conv_general_dilated(
            y, w, window_strides=(1, 1), padding=[(pad, pad), (pad, pad)],
            dimension_numbers=("NCHW", "OIHW", "NCHW"),
            precision=jax.lax.Precision.HIGHEST)
        return o + b[None, :, None, None]

    a = conv(conv(xn, p["w1a"], p["b1a"], 0), p["w1b"], p["b1b"], 1)
    b = conv(conv(xn, p["w2a"], p["b2a"], 0), p["w2b"], p["b2b"], 1)
    z = jax.nn.gelu(a, approximate=False) * b
    return x + conv(z, p["wc"], p["bc"], 0)


if __name__ == "__main__":
    C = 4
    C4 = 4 * C
    key = jax.random.PRNGKey(0)
    keys = jax.random.split(key, 11)
    params = {
        "w1a": jax.random.normal(keys[0], (C4, C, 1, 1), jnp.float32) * 0.2,
        "b1a": jax.random.normal(keys[1], (C4,), jnp.float32) * 0.05,
        "w1b": jax.random.normal(keys[2], (C4, C4, 3, 3), jnp.float32) * 0.05,
        "b1b": jax.random.normal(keys[3], (C4,), jnp.float32) * 0.05,
        "w2a": jax.random.normal(keys[4], (C4, C, 1, 1), jnp.float32) * 0.2,
        "b2a": jax.random.normal(keys[5], (C4,), jnp.float32) * 0.05,
        "w2b": jax.random.normal(keys[6], (C4, C4, 3, 3), jnp.float32) * 0.05,
        "b2b": jax.random.normal(keys[7], (C4,), jnp.float32) * 0.05,
        "wc": jax.random.normal(keys[8], (C, C4, 1, 1), jnp.float32) * 0.1,
        "bc": jax.random.normal(keys[9], (C,), jnp.float32) * 0.05,
    }
    x = jax.random.normal(keys[10], (2, C, 16, 16), jnp.float32)

    packed = jax.tree_util.tree_map(jax.block_until_ready, pack_gdfn_params(params))
    fwd = jax.jit(gdfn_pallas)

    out = jax.block_until_ready(fwd(x, packed))
    ref = jax.block_until_ready(gdfn_reference(x, params))
    np.testing.assert_allclose(np.asarray(out), np.asarray(ref), atol=2e-3, rtol=2e-3)
    print("KERNEL_OK")
</pallas_src>

<mosaic_0001>
module attributes {stable_mosaic.version = 11 : i64} {
  func.func @gdfn_kernel(%arg0: i32, %arg1: memref<1x4x256xf32, #tpu.memory_space<vmem>>, %arg2: memref<8x256xf32, #tpu.memory_space<vmem>>, %arg3: memref<32x45xf32, #tpu.memory_space<vmem>>, %arg4: memref<32x1xf32, #tpu.memory_space<vmem>>, %arg5: memref<4x16xf32, #tpu.memory_space<vmem>>, %arg6: memref<4x1xf32, #tpu.memory_space<vmem>>, %arg7: memref<1x4x256xf32, #tpu.memory_space<vmem>>) attributes {dimension_semantics = [#tpu.dimension_semantics<parallel>], iteration_bounds = array<i64: 2>, scalar_prefetch = 0 : i64, scratch_operands = 0 : i64, tpu.core_type = #tpu.core_type<tc>, window_params = [{transform_indices = @transform_0, window_bounds = array<i64: 1, 4, 256>}, {pipeline_mode = #tpu.pipeline_mode<synchronous>, transform_indices = @transform_1, window_bounds = array<i64: 8, 256>}, {pipeline_mode = #tpu.pipeline_mode<synchronous>, transform_indices = @transform_2, window_bounds = array<i64: 32, 45>}, {pipeline_mode = #tpu.pipeline_mode<synchronous>, transform_indices = @transform_3, window_bounds = array<i64: 32, 1>}, {pipeline_mode = #tpu.pipeline_mode<synchronous>, transform_indices = @transform_4, window_bounds = array<i64: 4, 16>}, {pipeline_mode = #tpu.pipeline_mode<synchronous>, transform_indices = @transform_5, window_bounds = array<i64: 4, 1>}, {transform_indices = @transform_6, window_bounds = array<i64: 1, 4, 256>}]} {
    %c0 = arith.constant 0 : index
    %c0_0 = arith.constant 0 : index
    %c0_1 = arith.constant 0 : index
    %0 = vector.load %arg1[%c0, %c0_0, %c0_1] : memref<1x4x256xf32, #tpu.memory_space<vmem>>, vector<1x4x256xf32>
    %1 = vector.shape_cast %0 : vector<1x4x256xf32> to vector<4x256xf32>
    %cst = arith.constant dense<0.000000e+00> : vector<4xf32>
    %2 = vector.multi_reduction <add>, %1, %cst [1] : vector<4x256xf32> to vector<4xf32>
    %3 = vector.shape_cast %2 : vector<4xf32> to vector<4x1xf32>
    %cst_2 = arith.constant 2.560000e+02 : f32
    %4 = vector.broadcast %cst_2 : f32 to vector<4x1xf32>
    %5 = arith.divf %3, %4 : vector<4x1xf32>
    %6 = vector.broadcast %5 : vector<4x1xf32> to vector<4x256xf32>
    %7 = arith.subf %1, %6 : vector<4x256xf32>
    %8 = arith.mulf %7, %7 : vector<4x256xf32>
    %cst_3 = arith.constant dense<0.000000e+00> : vector<4xf32>
    %9 = vector.multi_reduction <add>, %8, %cst_3 [1] : vector<4x256xf32> to vector<4xf32>
    %10 = vector.shape_cast %9 : vector<4xf32> to vector<4x1xf32>
    %cst_4 = arith.constant 2.560000e+02 : f32
    %11 = vector.broadcast %cst_4 : f32 to vector<4x1xf32>
    %12 = arith.divf %10, %11 : vector<4x1xf32>
    %13 = vector.broadcast %5 : vector<4x1xf32> to vector<4x256xf32>
    %14 = arith.subf %1, %13 : vector<4x256xf32>
    %cst_5 = arith.constant 9.99999974E-6 : f32
    %15 = vector.broadcast %cst_5 : f32 to vector<4x1xf32>
    %16 = arith.addf %12, %15 : vector<4x1xf32>
    %17 = math.rsqrt %16 : vector<4x1xf32>
    %18 = vector.broadcast %17 : vector<4x1xf32> to vector<4x256xf32>
    %19 = arith.mulf %14, %18 : vector<4x256xf32>
    %cst_6 = arith.constant 1.000000e+00 : f32
    %20 = vector.broadcast %cst_6 : f32 to vector<1x256xf32>
    %21 = tpu.concatenate %19, %20 in 0 : vector<4x256xf32>, vector<1x256xf32> -> vector<5x256xf32>
    %c17_i32 = arith.constant 17 : i32
    %22 = tpu.dynamic_rotate %21 by %c17_i32 dim 1 : vector<5x256xf32>, i32 -> vector<5x256xf32>
    %c0_7 = arith.constant 0 : index
    %c0_8 = arith.constant 0 : index
    %23 = vector.load %arg2[%c0_7, %c0_8] : memref<8x256xf32, #tpu.memory_space<vmem>>, vector<1x256xf32>
    %24 = vector.broadcast %23 : vector<1x256xf32> to vector<5x256xf32>
    %25 = arith.mulf %22, %24 : vector<5x256xf32>
    %c16_i32 = arith.constant 16 : i32
    %26 = tpu.dynamic_rotate %21 by %c16_i32 dim 1 : vector<5x256xf32>, i32 -> vector<5x256xf32>
    %c1 = arith.constant 1 : index
    %c0_9 = arith.constant 0 : index
    %27 = vector.load %arg2[%c1, %c0_9] : memref<8x256xf32, #tpu.memory_space<vmem>>, vector<1x256xf32>
    %28 = vector.broadcast %27 : vector<1x256xf32> to vector<5x256xf32>
    %29 = arith.mulf %26, %28 : vector<5x256xf32>
    %c15_i32 = arith.constant 15 : i32
    %30 = tpu.dynamic_rotate %21 by %c15_i32 dim 1 : vector<5x256xf32>, i32 -> vector<5x256xf32>
    %c2 = arith.constant 2 : index
    %c0_10 = arith.constant 0 : index
    %31 = vector.load %arg2[%c2, %c0_10] : memref<8x256xf32, #tpu.memory_space<vmem>>, vector<1x256xf32>
    %32 = vector.broadcast %31 : vector<1x256xf32> to vector<5x256xf32>
    %33 = arith.mulf %30, %32 : vector<5x256xf32>
    %c1_i32 = arith.constant 1 : i32
    %34 = tpu.dynamic_rotate %21 by %c1_i32 dim 1 : vector<5x256xf32>, i32 -> vector<5x256xf32>
    %c3 = arith.constant 3 : index
    %c0_11 = arith.constant 0 : index
    %35 = vector.load %arg2[%c3, %c0_11] : memref<8x256xf32, #tpu.memory_space<vmem>>, vector<1x256xf32>
    %36 = vector.broadcast %35 : vector<1x256xf32> to vector<5x256xf32>
    %37 = arith.mulf %34, %36 : vector<5x256xf32>
    %c255_i32 = arith.constant 255 : i32
    %38 = tpu.dynamic_rotate %21 by %c255_i32 dim 1 : vector<5x256xf32>, i32 -> vector<5x256xf32>
    %c4 = arith.constant 4 : index
    %c0_12 = arith.constant 0 : index
    %39 = vector.load %arg2[%c4, %c0_12] : memref<8x256xf32, #tpu.memory_space<vmem>>, vector<1x256xf32>
    %40 = vector.broadcast %39 : vector<1x256xf32> to vector<5x256xf32>
    %41 = arith.mulf %38, %40 : vector<5x256xf32>
    %c241_i32 = arith.constant 241 : i32
    %42 = tpu.dynamic_rotate %21 by %c241_i32 dim 1 : vector<5x256xf32>, i32 -> vector<5x256xf32>
    %c5 = arith.constant 5 : index
    %c0_13 = arith.constant 0 : index
    %43 = vector.load %arg2[%c5, %c0_13] : memref<8x256xf32, #tpu.memory_space<vmem>>, vector<1x256xf32>
    %44 = vector.broadcast %43 : vector<1x256xf32> to vector<5x256xf32>
    %45 = arith.mulf %42, %44 : vector<5x256xf32>
    %c240_i32 = arith.constant 240 : i32
    %46 = tpu.dynamic_rotate %21 by %c240_i32 dim 1 : vector<5x256xf32>, i32 -> vector<5x256xf32>
    %c6 = arith.constant 6 : index
    %c0_14 = arith.constant 0 : index
    %47 = vector.load %arg2[%c6, %c0_14] : memref<8x256xf32, #tpu.memory_space<vmem>>, vector<1x256xf32>
    %48 = vector.broadcast %47 : vector<1x256xf32> to vector<5x256xf32>
    %49 = arith.mulf %46, %48 : vector<5x256xf32>
    %c239_i32 = arith.constant 239 : i32
    %50 = tpu.dynamic_rotate %21 by %c239_i32 dim 1 : vector<5x256xf32>, i32 -> vector<5x256xf32>
    %c7 = arith.constant 7 : index
    %c0_15 = arith.constant 0 : index
    %51 = vector.load %arg2[%c7, %c0_15] : memref<8x256xf32, #tpu.memory_space<vmem>>, vector<1x256xf32>
    %52 = vector.broadcast %51 : vector<1x256xf32> to vector<5x256xf32>
    %53 = arith.mulf %50, %52 : vector<5x256xf32>
    %54 = tpu.concatenate %25, %29, %33, %37, %21, %41, %45, %49, %53 in 0 : vector<5x256xf32>, vector<5x256xf32>, vector<5x256xf32>, vector<5x256xf32>, vector<5x256xf32>, vector<5x256xf32>, vector<5x256xf32>, vector<5x256xf32>, vector<5x256xf32> -> vector<45x256xf32>
    %c0_16 = arith.constant 0 : index
    %c0_17 = arith.constant 0 : index
    %55 = vector.load %arg3[%c0_16, %c0_17] : memref<32x45xf32, #tpu.memory_space<vmem>>, vector<32x45xf32>
    %cst_18 = arith.constant dense<0.000000e+00> : vector<32x256xf32>
    %56 = tpu.matmul %55, %54, %cst_18 {dimension_numbers = #tpu.dot_dimension_numbers<[1], [0], [0], [1], [0, 0, 1, 1], [], []>} : vector<32x45xf32>, vector<45x256xf32>, vector<32x256xf32> -> vector<32x256xf32>
    %c0_19 = arith.constant 0 : index
    %c0_20 = arith.constant 0 : index
    %57 = vector.load %arg4[%c0_19, %c0_20] : memref<32x1xf32, #tpu.memory_space<vmem>>, vector<32x1xf32>
    %58 = vector.broadcast %57 : vector<32x1xf32> to vector<32x256xf32>
    %59 = arith.addf %56, %58 : vector<32x256xf32>
    %60 = vector.extract_strided_slice %59 {offsets = [0, 0], sizes = [16, 256], strides = [1, 1]} : vector<32x256xf32> to vector<16x256xf32>
    %cst_21 = arith.constant 5.000000e-01 : f32
    %61 = vector.broadcast %cst_21 : f32 to vector<16x256xf32>
    %62 = arith.mulf %61, %60 : vector<16x256xf32>
    %cst_22 = arith.constant 0.707106769 : f32
    %63 = vector.broadcast %cst_22 : f32 to vector<16x256xf32>
    %64 = arith.mulf %60, %63 : vector<16x256xf32>
    %cst_23 = arith.constant 0.000000e+00 : f32
    %65 = vector.broadcast %cst_23 : f32 to vector<16x256xf32>
    %66 = arith.cmpf oge, %64, %65 : vector<16x256xf32>
    %cst_24 = arith.constant 1.000000e+00 : f32
    %cst_25 = arith.constant -1.000000e+00 : f32
    %67 = vector.broadcast %cst_24 : f32 to vector<16x256xf32>
    %68 = vector.broadcast %cst_25 : f32 to vector<16x256xf32>
    %69 = arith.select %66, %67, %68 : vector<16x256xi1>, vector<16x256xf32>
    %70 = math.absf %64 : vector<16x256xf32>
    %cst_26 = arith.constant 0.327591091 : f32
    %71 = vector.broadcast %cst_26 : f32 to vector<16x256xf32>
    %72 = arith.mulf %71, %70 : vector<16x256xf32>
    %cst_27 = arith.constant 1.000000e+00 : f32
    %73 = vector.broadcast %cst_27 : f32 to vector<16x256xf32>
    %74 = arith.addf %73, %72 : vector<16x256xf32>
    %75 = tpu.reciprocal %74 {approx = true} : vector<16x256xf32> -> vector<16x256xf32>
    %cst_28 = arith.constant 1.06140542 : f32
    %76 = vector.broadcast %cst_28 : f32 to vector<16x256xf32>
    %77 = arith.mulf %76, %75 : vector<16x256xf32>
    %cst_29 = arith.constant -1.45315206 : f32
    %78 = vector.broadcast %cst_29 : f32 to vector<16x256xf32>
    %79 = arith.addf %77, %78 : vector<16x256xf32>
    %80 = arith.mulf %79, %75 : vector<16x256xf32>
    %cst_30 = arith.constant 1.42141378 : f32
    %81 = vector.broadcast %cst_30 : f32 to vector<16x256xf32>
    %82 = arith.addf %80, %81 : vector<16x256xf32>
    %83 = arith.mulf %82, %75 : vector<16x256xf32>
    %cst_31 = arith.constant -0.284496725 : f32
    %84 = vector.broadcast %cst_31 : f32 to vector<16x256xf32>
    %85 = arith.addf %83, %84 : vector<16x256xf32>
    %86 = arith.mulf %85, %75 : vector<16x256xf32>
    %cst_32 = arith.constant 0.254829586 : f32
    %87 = vector.broadcast %cst_32 : f32 to vector<16x256xf32>
    %88 = arith.addf %86, %87 : vector<16x256xf32>
    %89 = arith.mulf %88, %75 : vector<16x256xf32>
    %cst_33 = arith.constant 0.000000e+00 : f32
    %90 = vector.broadcast %cst_33 : f32 to vector<16x256xf32>
    %91 = arith.subf %90, %70 : vector<16x256xf32>
    %92 = arith.mulf %91, %70 : vector<16x256xf32>
    %93 = math.exp %92 : vector<16x256xf32>
    %94 = arith.mulf %89, %93 : vector<16x256xf32>
    %cst_34 = arith.constant 1.000000e+00 : f32
    %95 = vector.broadcast %cst_34 : f32 to vector<16x256xf32>
    %96 = arith.subf %95, %94 : vector<16x256xf32>
    %97 = arith.mulf %69, %96 : vector<16x256xf32>
    %cst_35 = arith.constant 1.000000e+00 : f32
    %98 = vector.broadcast %cst_35 : f32 to vector<16x256xf32>
    %99 = arith.addf %98, %97 : vector<16x256xf32>
    %100 = arith.mulf %62, %99 : vector<16x256xf32>
    %101 = vector.extract_strided_slice %59 {offsets = [16, 0], sizes = [16, 256], strides = [1, 1]} : vector<32x256xf32> to vector<16x256xf32>
    %102 = arith.mulf %100, %101 : vector<16x256xf32>
    %c0_36 = arith.constant 0 : index
    %c0_37 = arith.constant 0 : index
    %103 = vector.load %arg5[%c0_36, %c0_37] : memref<4x16xf32, #tpu.memory_space<vmem>>, vector<4x16xf32>
    %cst_38 = arith.constant dense<0.000000e+00> : vector<4x256xf32>
    %104 = tpu.matmul %103, %102, %cst_38 {dimension_numbers = #tpu.dot_dimension_numbers<[1], [0], [0], [1], [0, 0, 1, 1], [], []>} : vector<4x16xf32>, vector<16x256xf32>, vector<4x256xf32> -> vector<4x256xf32>
    %c0_39 = arith.constant 0 : index
    %c0_40 = arith.constant 0 : index
    %105 = vector.load %arg6[%c0_39, %c0_40] : memref<4x1xf32, #tpu.memory_space<vmem>>, vector<4x1xf32>
    %106 = vector.broadcast %105 : vector<4x1xf32> to vector<4x256xf32>
    %107 = arith.addf %104, %106 : vector<4x256xf32>
    %108 = arith.addf %1, %107 : vector<4x256xf32>
    %c0_41 = arith.constant 0 : index
    %c0_42 = arith.constant 0 : index
    %c0_43 = arith.constant 0 : index
    %109 = vector.load %arg7[%c0_41, %c0_42, %c0_43] : memref<1x4x256xf32, #tpu.memory_space<vmem>>, vector<1x4x256xf32>
    %110 = vector.shape_cast %109 : vector<1x4x256xf32> to vector<4x256xf32>
    %111 = vector.shape_cast %108 : vector<4x256xf32> to vector<1x4x256xf32>
    tpu.vector_store %arg7[%c0_41, %c0_42, %c0_43], %111 {strides = array<i32>} : memref<1x4x256xf32, #tpu.memory_space<vmem>>, vector<1x4x256xf32>,
    return
  }
  func.func @transform_0(%arg0: i32) -> (i32, i32, i32) {
    %c0_i32 = arith.constant 0 : i32
    %c0_i32_0 = arith.constant 0 : i32
    %c0_i32_1 = arith.constant 0 : i32
    return %arg0, %c0_i32, %c0_i32_0 : i32, i32, i32
  }
  func.func @transform_1(%arg0: i32) -> (i32, i32) {
    %c0_i32 = arith.constant 0 : i32
    %c0_i32_0 = arith.constant 0 : i32
    %c0_i32_1 = arith.constant 0 : i32
    return %c0_i32, %c0_i32_0 : i32, i32
  }
  func.func @transform_2(%arg0: i32) -> (i32, i32) {
    %c0_i32 = arith.constant 0 : i32
    %c0_i32_0 = arith.constant 0 : i32
    %c0_i32_1 = arith.constant 0 : i32
    return %c0_i32, %c0_i32_0 : i32, i32
  }
  func.func @transform_3(%arg0: i32) -> (i32, i32) {
    %c0_i32 = arith.constant 0 : i32
    %c0_i32_0 = arith.constant 0 : i32
    %c0_i32_1 = arith.constant 0 : i32
    return %c0_i32, %c0_i32_0 : i32, i32
  }
  func.func @transform_4(%arg0: i32) -> (i32, i32) {
    %c0_i32 = arith.constant 0 : i32
    %c0_i32_0 = arith.constant 0 : i32
    %c0_i32_1 = arith.constant 0 : i32
    return %c0_i32, %c0_i32_0 : i32, i32
  }
  func.func @transform_5(%arg0: i32) -> (i32, i32) {
    %c0_i32 = arith.constant 0 : i32
    %c0_i32_0 = arith.constant 0 : i32
    %c0_i32_1 = arith.constant 0 : i32
    return %c0_i32, %c0_i32_0 : i32, i32
  }
  func.func @transform_6(%arg0: i32) -> (i32, i32, i32) {
    %c0_i32 = arith.constant 0 : i32
    %c0_i32_0 = arith.constant 0 : i32
    %c0_i32_1 = arith.constant 0 : i32
    return %arg0, %c0_i32, %c0_i32_0 : i32, i32, i32
  }
}

</mosaic_0001>

<bundles_post_ra>
// kernel: gdfn_pallas.1
= control target key start
LH: loop header
LB: loop body
LE: loop exit
PB: predicated region body
PF: predicated region fallthrough
CT: control target
= control target key end

     0   :  { %s978_s21 = smov 0   ;;  %s1162_s0 = inlined_call_operand.vmem [shape: f32[2,4,256], index: 0, kind: input, shape index: {}]   ;;  %s1163_s1 = inlined_call_operand.vmem [shape: f32[8,256], index: 1, kind: input, shape index: {}]   ;;  %s1164_s2 = inlined_call_operand.vmem [shape: f32[32,45], index: 2, kind: input, shape index: {}]   ;;  %s1165_s3 = inlined_call_operand.vmem [shape: f32[32,1], index: 3, kind: input, shape index: {}]   ;;  %s1166_s4 = inlined_call_operand.vmem [shape: f32[4,16], index: 4, kind: input, shape index: {}]   ;;  %s1167_s5 = inlined_call_operand.vmem [shape: f32[4,1], index: 5, kind: input, shape index: {}]   ;;  %s1168_s6 = inlined_call_operand.vmem [shape: f32[2,4,256], index: 6, kind: output, shape index: {}]  }
   0x1 LB: > { %s836_s22 = sadd.s32 4294967295, %s929_s21   ;;  %p840_p0 = scmp.ge.s32.totalorder %s929_s21, 1  ;;  %s929_s21 = sphi %s978_s21, %s16_s21  }
   0x2   : > { %p212_p1 = scmp.lt.s32.totalorder %s929_s21, 3 }
   0x4   : > { %p213_p2 = pnand %p840_p0, %p212_p1 }
   0x5   : > { %p242_p3 = scmp.lt.s32.totalorder (!%p213_p2), %s836_s22, 1  ;;  %s933_s27 = smov (!%p213_p2), 127  }
   0x6   : > { %216 = sbr.rel (%p213_p2) target bundleno = 807 (0x327), region = 44  ;;  %s934_s28 = smov (!%p213_p2), 112  }
   0x7   : > { %s935_s29 = smov (!%p213_p2), 113   ;;  %s936_s30 = smov (!%p213_p2), 16  }
   0x8   : > { %s937_s7 = smov (!%p213_p2), 17   ;;  %s938_s8 = smov (!%p213_p2), 111  }
   0x9   : > { %s939_s9 = smov (!%p213_p2), 1   ;;  %s940_s10 = smov (!%p213_p2), 15  }
   0xb   : > { %s1170_s22 = smov (!%p242_p3, %s836_s22), 1  ;;  %vm259_vm0 = vcmask 1043456   ;;  %v931_v6 = vmov 256.0   ;;  %v932_v12 = vmov 839922192   ;;  %v323_v45 = vlaneseq }
   0xc   : > { %s866_s23 = sshll.u32 %s1170_s22, 3  ;;  %903 = vrcp.f32 %v931_v6  ;;  %v275_v13 = vunpack.c.l.s4 %v932_v12  ;;  %v848_v49 = vld [vmem:[%s1163_s1 + $0x4] ss:$8 sm:$0x3]  ;;  %vm490_vm9 = vcmask 1044480   ;;  %vm501_vm10 = vcmask 1040384  }
   0xd   : > { %s246_s26 = scalar_lea.vmem %s1162_s0, %s866_s23  ;;  %v1024_v48 = vand.u32 127, %v323_v45  ;;  %v849_v50 = vld [vmem:[%s1163_s1 + $0x5] ss:$8 sm:$0x3]  ;;  %v394_v53 = vperm.slane %v848_v49, 0  ;;  %v395_v56 = vperm.slane %v848_v49, 1 }
   0xe   : > { %v994_v0 = vld [vmem:[%s246_s26] sm:$0xff]  ;;  %v276_v15 = vunpack.c.0.s8 %v275_v13  ;;  %v410_v55 = vperm.slane %v849_v50, 0  ;;  %v411_v58 = vperm.slane %v849_v50, 1  ;;  %vm507_vm11 = vcmask 1042432  }
   0xf   : > { %254 = vst [vmem:[#allocation1] ss:$2 sm:$0xff] %v994_v0  ;;  %vm388_vm5 = vcmp.lt.s32.totalorder %v1024_v48, 127  ;;  %vm404_vm6 = vcmp.lt.s32.totalorder %v1024_v48, 113  ;;  %vm420_vm7 = vcmp.lt.s32.totalorder %v1024_v48, 112  ;;  %vm436_vm8 = vcmp.lt.s32.totalorder %v1024_v48, 111 }
  0x10   : > { %v850_v51 = vld [vmem:[%s1163_s1 + $0x6] ss:$8 sm:$0x3]  ;;  %v851_v63 = vld [vmem:[%s1163_s1 + $0x7] ss:$8 sm:$0x3] }
  0x11   : > { %v426_v61 = vperm.slane %v850_v51, 0  ;;  %vm504_vm12 = vcmask 1045504   ;;  %vm372_vm13 = vcmp.lt.s32.totalorder %v1024_v48, 1  ;;  %vm340_vm14 = vcmp.lt.s32.totalorder %v1024_v48, 16 }
  0x12   : > { %v904_v7 = vpop.eup %903  ;;  %v941_v45 = vmov 0   ;;  %vm356_vm15 = vcmp.lt.s32.totalorder %v1024_v48, 15 }
  0x13   : > { %v266_v8 = vmul.f32 256.0, %v904_v7  ;;  %vm270_vm1 = vweird.f32 %v904_v7  ;;  %901 = vset.pattern.permute.xlu0 %v941_v45  ;;  %900 = vset.pattern.permute.xlu2 %v941_v45 }
  0x14   : > { %902 = vset.pattern.permute.xlu1 %v941_v45 }
  0x15   : > { %v267_v9 = vsub.f32 1.0, %v266_v8 }
  0x16   : > { %v255_v1 = vld.sshfl [vmem:[#allocation1] sm:$0xff pattern:$0x75316420]  ;;  %v256_v2 = vld.sshfl [vmem:[#allocation1 + $0x8] sm:$0xff pattern:$0x75316420] }
  0x17   : > { %v260_v3 = vsel %vm259_vm0, %v255_v1, 0.0  ;;  %v261_v4 = vsel %vm259_vm0, %v256_v2, 0.0  ;;  %v268_v10 = vmul.f32 %v904_v7, %v267_v9  ;;  %v427_v1 = vperm.slane %v850_v51, 1 }
  0x18   : > { %v262_v5 = vadd.f32 %v261_v4, %v260_v3  ;;  %v442_v9 = vperm.slane %v851_v63, 0 }
  0x19   : > { %v269_v11 = vadd.f32 %v904_v7, %v268_v10  ;;  %v443_v10 = vperm.slane %v851_v63, 1 }
  0x1a   : > { %263 = vadd.xlane.f32.xlu0 %v262_v5 }
  0x1b   : > { %v271_v14 = vsel %vm270_vm1, %v904_v7, %v269_v11  ;;  %vm493_vm1 = vcmask 1041408  }
  0x8d   : > { %v264_v16 = vpop.xlane.xlu0 %263 }
  0x8e   : > { %v272_v17 = vmul.f32 %v271_v14, %v264_v16 }
  0x90   : > { %v277_v18 = vperm.slane %v272_v17, %v276_v15 }
  0x92   : > { %v279_v19 = vsub.f32 %v994_v0, %v277_v18 }
  0x94   : > { %v280_v20 = vmul.f32 %v279_v19, %v279_v19 }
  0x96   : > { %282 = vst [vmem:[#allocation1] ss:$2 sm:$0xff] %v280_v20 }
  0x9d   : > { %v283_v21 = vld.sshfl [vmem:[#allocation1] sm:$0xff pattern:$0x75316420]  ;;  %v284_v22 = vld.sshfl [vmem:[#allocation1 + $0x8] sm:$0xff pattern:$0x75316420] }
  0x9e   : > { %v287_v23 = vsel %vm259_vm0, %v283_v21, 0.0  ;;  %v288_v24 = vsel %vm259_vm0, %v284_v22, 0.0 }
  0x9f   : > { %v289_v25 = vadd.f32 %v288_v24, %v287_v23 }
  0xa1   : > { %290 = vadd.xlane.f32.xlu0 %v289_v25  ;;  %v847_v25 = vld [vmem:[%s1163_s1 + $0x3] ss:$8 sm:$0x3] }
 0x114   : > { %v291_v26 = vpop.xlane.xlu0 %290 }
 0x115   : > { %v292_v27 = vmul.f32 %v291_v26, %v271_v14 }
 0x117   : > { %v293_v28 = vadd.f32 1e-05, %v292_v27 }
 0x119   : > { %905 = vrsqrt.f32 %v293_v28  ;;  %vm300_vm3 = vweird.f32 %v293_v28 }
 0x11f   : > { %v906_v29 = vpop.eup %905 }
 0x120   : > { %v295_v30 = vmul.f32 %v906_v29, %v293_v28  ;;  %vm301_vm2 = vweird.f32 %v906_v29 }
 0x121   : > { %vm302_vm4 = vmor %vm300_vm3, %vm301_vm2  ;;  %vm496_vm2 = vcmask 1046528   ;;  %vm325_vm3 = vcmp.lt.s32.totalorder %v1024_v48, 17 }
 0x122   : > { %v296_v31 = vmul.f32 %v906_v29, %v295_v30 }
 0x124   : > { %v297_v32 = vmul.f32 0.5, %v296_v31 }
 0x126   : > { %v298_v33 = vsub.f32 1.5, %v297_v32  ;;  %v378_v32 = vperm.slane %v847_v25, 0 }
 0x128   : > { %v299_v34 = vmul.f32 %v906_v29, %v298_v33  ;;  %v379_v33 = vperm.slane %v847_v25, 1  ;;  %v513_v25 = vld [vmem:[%s1164_s2 + $0x18] sm:$0xff] }
 0x12a   : > { %v303_v35 = vsel %vm302_vm4, %v906_v29, %v299_v34  ;;  %vm538_vm4 = vcmask 367616  }
 0x12b   : > { %v308_v36 = vperm.slane %v303_v35, %v276_v15  ;;  %v845_v35 = vld [vmem:[%s1163_s1 + $0x1] ss:$8 sm:$0x3] }
 0x12c   : > { %v347_v49 = vperm.slane %v845_v35, 1 }
 0x12d   : > { %v310_v37 = vmul.f32 %v308_v36, %v279_v19 }
 0x12f   : > { %312 = vst [vmem:[#allocation1] ss:$2 sm:$0xff] %v310_v37 }
 0x136   : > { %v313_v38 = vld.sshfl [vmem:[#allocation1] sm:$0xff pattern:$0x75316420]  ;;  %v314_v40 = vld.sshfl [vmem:[#allocation1 + $0x8] sm:$0xff pattern:$0x75316420] }
 0x137   : > { %v1003_v39 = vsel %vm259_vm0, %v313_v38, 1.0  ;;  %v1009_v41 = vsel %vm259_vm0, %v314_v40, 1.0  ;;  %v514_v38 = vld [vmem:[%s1165_s3] sm:$0xff] }
 0x138   : > { %384 = vrot.lane.b32.xlu0 %v1003_v39, %s933_s27  ;;  %416 = vrot.lane.b32.xlu2 %v1003_v39, %s934_s28  ;;  %v468_v12 = vrot.slane %v1003_v39, 4  ;;  %v469_v24 = vrot.slane %v1009_v41, 4 }
 0x139   : > { %400 = vrot.lane.b32.xlu1 %v1003_v39, %s935_s29 }
 0x140   : > { %338 = vrot.lane.b32.xlu0 %v1009_v41, %s936_s30  ;;  %418 = vrot.lane.b32.xlu2 %v1009_v41, %s934_s28 }
 0x141   : > { %402 = vrot.lane.b32.xlu1 %v1009_v41, %s935_s29 }
 0x148   : > { %319 = vrot.lane.b32.xlu0 %v1003_v39, %s937_s7  ;;  %432 = vrot.lane.b32.xlu2 %v1003_v39, %s938_s8 }
 0x149   : > { %386 = vrot.lane.b32.xlu1 %v1009_v41, %s933_s27 }
 0x150   : > { %368 = vrot.lane.b32.xlu2 %v1003_v39, %s939_s9  ;;  %520 = vperm.xlu0 %901, %v514_v38  }
 0x151   : > { %434 = vrot.lane.b32.xlu1 %v1009_v41, %s938_s8 }
 0x158   : > { %336 = vrot.lane.b32.xlu2 %v1003_v39, %s936_s30 }
 0x159   : > { %370 = vrot.lane.b32.xlu1 %v1009_v41, %s939_s9 }
 0x160   : > { %354 = vrot.lane.b32.xlu2 %v1009_v41, %s940_s10 }
 0x161   : > { %352 = vrot.lane.b32.xlu1 %v1003_v39, %s940_s10  ;;  %v517_v39 = vld [vmem:[%s1165_s3 + $0x18] sm:$0xff] }
 0x169   : > { %321 = vrot.lane.b32.xlu1 %v1009_v41, %s937_s7  ;;  %s251_s7 = scalar_lea.vmem %s1168_s6, %s866_s23 }
 0x171   : > { %535 = vperm.xlu1 %902, %v517_v39  }
 0x192   : > { %v417_v42 = vpop.permute.xlu2 %416 }
 0x19a   : > { %v419_v43 = vpop.permute.xlu2 %418 }
 0x19b   : > { %v421_v2 = vsel %vm420_vm7, %v417_v42, %v419_v43  ;;  %v422_v5 = vsel %vm420_vm7, %v419_v43, %v417_v42 }
 0x19c   : > { %v430_v11 = vmul.f32 %v426_v61, %v421_v2  ;;  %v431_v13 = vmul.f32 %v427_v1, %v422_v5  ;;  %v328_v5 = vld [vmem:[%s1163_s1] ss:$8 sm:$0x3] }
 0x19e   : > { %v486_v23 = vrot.slane %v430_v11, 5  ;;  %v487_v26 = vrot.slane %v431_v13, 5  ;;  %v331_v11 = vperm.slane %v328_v5, 1 }
 0x1a2   : > { %v433_v47 = vpop.permute.xlu2 %432 }
 0x1aa   : > { %v385_v52 = vpop.permute.xlu0 %384  ;;  %v369_v3 = vpop.permute.xlu2 %368 }
 0x1ab   : > { %v401_v44 = vpop.permute.xlu1 %400 }
 0x1b2   : > { %v337_v30 = vpop.permute.xlu2 %336  ;;  %v339_v40 = vpop.permute.xlu0 %338 }
 0x1b3   : > { %v403_v46 = vpop.permute.xlu1 %402  ;;  %v342_v50 = vsel %vm340_vm14, %v339_v40, %v337_v30 }
 0x1b4   : > { %v405_v59 = vsel %vm404_vm6, %v401_v44, %v403_v46  ;;  %v406_v62 = vsel %vm404_vm6, %v403_v46, %v401_v44  ;;  %v346_v46 = vperm.slane %v845_v35, 0 }
 0x1b5   : > { %v414_v6 = vmul.f32 %v410_v55, %v405_v59  ;;  %v415_v8 = vmul.f32 %v411_v58, %v406_v62  ;;  %v515_v59 = vld [vmem:[%s1165_s3 + $0x8] sm:$0xff] }
 0x1b6   : > { %v350_v58 = vmul.f32 %v346_v46, %v342_v50  ;;  %525 = vperm.xlu2 %900, %v515_v59  }
 0x1b7   : > { %v480_v16 = vrot.slane %v414_v6, 2  ;;  %v481_v20 = vrot.slane %v415_v8, 2 }
 0x1b9   : > { %v508_v28 = vsel %vm507_vm11, %v480_v16, %v486_v23  ;;  %v509_v31 = vsel %vm507_vm11, %v481_v20, %v487_v26  ;;  %v511_v26 = vld [vmem:[%s1164_s2 + $0x8] sm:$0xff] }
 0x1ba   : > { %v355_v61 = vpop.permute.xlu2 %354 }
 0x1bb   : > { %v387_v54 = vpop.permute.xlu1 %386 }
 0x1bc   : > { %v389_v57 = vsel %vm388_vm5, %v385_v52, %v387_v54  ;;  %v390_v60 = vsel %vm388_vm5, %v387_v54, %v385_v52 }
 0x1bd   : > { %v398_v4 = vmul.f32 %v394_v53, %v389_v57  ;;  %v399_v7 = vmul.f32 %v395_v56, %v390_v60  ;;  %v341_v53 = vsel %vm340_vm14, %v337_v30, %v339_v40 }
 0x1be   : > { %v351_v60 = vmul.f32 %v347_v49, %v341_v53 }
 0x1bf   : > { %v474_v14 = vrot.slane %v398_v4, 7  ;;  %v475_v17 = vrot.slane %v399_v7, 7  ;;  %v450_v4 = vrot.slane %v350_v58, 3 }
 0x1c0   : > { %v451_v6 = vrot.slane %v351_v60, 3 }
 0x1c1   : > { %v502_v27 = vsel %vm501_vm10, %v468_v12, %v474_v14  ;;  %v503_v29 = vsel %vm501_vm10, %v469_v24, %v475_v17  ;;  %v320_v17 = vpop.permute.xlu0 %319 }
 0x1c2   : > { %v505_v34 = vsel %vm504_vm12, %v502_v27, %v480_v16  ;;  %v506_v36 = vsel %vm504_vm12, %v503_v29, %v481_v20  ;;  %v724_v16 = vld [vmem:[%s1167_s5] sm:$0xf]  ;;  %v512_v27 = vld [vmem:[%s1164_s2 + $0x10] sm:$0xff] }
 0x1c3   : > { %v435_v15 = vpop.permute.xlu1 %434  ;;  %727 = vperm.xlu1 %902, %v724_v16  }
 0x1c4   : > { %v437_v18 = vsel %vm436_vm8, %v433_v47, %v435_v15  ;;  %v438_v19 = vsel %vm436_vm8, %v435_v15, %v433_v47  ;;  %v846_v47 = vld [vmem:[%s1163_s1 + $0x2] ss:$8 sm:$0x3]  ;;  %v516_v15 = vld [vmem:[%s1165_s3 + $0x10] sm:$0xff] }
 0x1c5   : > { %v446_v21 = vmul.f32 %v442_v9, %v437_v18  ;;  %v447_v22 = vmul.f32 %v443_v10, %v438_v19  ;;  %v362_v56 = vperm.slane %v846_v47, 0  ;;  %v363_v57 = vperm.slane %v846_v47, 1  ;;  %530 = vperm.xlu2 %900, %v516_v15  }
 0x1c6   : > { %v330_v10 = vperm.slane %v328_v5, 0 }
 0x1c7   : > { %852 = vmatpush.msk.msra.mxu0 %vm490_vm9, %v446_v21  ;;  %868 = vmatpush.msk.msra.mxu2 %vm490_vm9, %v446_v21 }
 0x1c8   : > { %857 = vmatpush.msk.msra.mxu1 %vm490_vm9, %v447_v22  ;;  %874 = vmatpush.msk.msra.mxu3 %vm490_vm9, %v447_v22 }
 0x1c9   : > { %568 = vmatpush.msra.mxu0 %v508_v28  ;;  %869 = vmatpush.msra.mxu2 %v508_v28  ;;  %v521_v28 = vpop.permute.xlu0 %520 }
 0x1ca   : > { %597 = vmatpush.msra.mxu1 %v509_v31  ;;  %875 = vmatpush.msra.mxu3 %v509_v31 }
 0x1cb   : > { %v371_v37 = vpop.permute.xlu1 %370  ;;  %569 = vmatpush.msra.mxu0 %v505_v34  ;;  %870 = vmatpush.msra.mxu2 %v505_v34 }
 0x1cc   : > { %598 = vmatpush.msra.mxu1 %v506_v36  ;;  %876 = vmatpush.msra.mxu3 %v506_v36  ;;  %v373_v41 = vsel %vm372_vm13, %v369_v3, %v371_v37  ;;  %v374_v42 = vsel %vm372_vm13, %v371_v37, %v369_v3 }
 0x1cd   : > { %v382_v43 = vmul.f32 %v378_v32, %v374_v42  ;;  %v383_v44 = vmul.f32 %v379_v33, %v373_v41 }
 0x1cf   : > { %v462_v51 = vrot.slane %v382_v43, 1  ;;  %v463_v52 = vrot.slane %v383_v44, 1 }
 0x1d1   : > { %v499_v54 = vsel %vm259_vm0, %v462_v51, %v468_v12  ;;  %v500_v55 = vsel %vm259_vm0, %v463_v52, %v469_v24  ;;  %v510_v24 = vld [vmem:[%s1164_s2] sm:$0xff] }
 0x1d2   : > { %570 = vmatpush.msra.mxu0 %v499_v54  ;;  %871 = vmatpush.msra.mxu2 %v499_v54 }
 0x1d3   : > { %599 = vmatpush.msra.mxu1 %v500_v55  ;;  %877 = vmatpush.msra.mxu3 %v500_v55  ;;  %v353_v62 = vpop.permute.xlu1 %352 }
 0x1d4   : > { %v357_v63 = vsel %vm356_vm15, %v353_v62, %v355_v61  ;;  %v358_v1 = vsel %vm356_vm15, %v355_v61, %v353_v62 }
 0x1d5   : > { %v366_v2 = vmul.f32 %v362_v56, %v358_v1  ;;  %v367_v3 = vmul.f32 %v363_v57, %v357_v63 }
 0x1d7   : > { %v456_v7 = vrot.slane %v366_v2, 6  ;;  %v457_v8 = vrot.slane %v367_v3, 6 }
 0x1d9   : > { %v495_v9 = vsel %vm493_vm1, %v451_v6, %v457_v8  ;;  %v494_v12 = vsel %vm493_vm1, %v450_v4, %v456_v7 }
 0x1da   : > { %v498_v13 = vsel %vm496_vm2, %v495_v9, %v463_v52  ;;  %v497_v14 = vsel %vm496_vm2, %v494_v12, %v462_v51 }
 0x1db   : > { %600 = vmatpush.msra.mxu1 %v498_v13  ;;  %878 = vmatpush.msra.mxu3 %v498_v13  ;;  %v322_v18 = vpop.permute.xlu1 %321 }
 0x1dc   : > { %v326_v19 = vsel %vm325_vm3, %v320_v17, %v322_v18  ;;  %v327_v48 = vsel %vm325_vm3, %v322_v18, %v320_v17  ;;  %571 = vmatpush.msra.mxu0 %v497_v14  ;;  %872 = vmatpush.msra.mxu2 %v497_v14 }
 0x1dd   : > { %v334_v20 = vmul.f32 %v330_v10, %v327_v48  ;;  %v335_v21 = vmul.f32 %v331_v11, %v326_v19 }
 0x1df   : > { %v491_v22 = vsel %vm490_vm9, %v334_v20, %v450_v4  ;;  %v492_v23 = vsel %vm490_vm9, %v335_v21, %v451_v6  ;;  %vm730_vm9 = vcmask 130048  }
 0x1e0   : > { %572 = vmatpush.msra.mxu0 %v491_v22  ;;  %873 = vmatpush.msra.mxu2 %v491_v22 }
 0x1e1   : > { %601 = vmatpush.msra.mxu1 %v492_v23  ;;  %879 = vmatpush.msra.mxu3 %v492_v23 }
 0x1e2   : > { %853 = vmatmul.msk.f32.vlgmr.msra.gmra.mxu0 %vm538_vm4, %v510_v24  ;;  %858 = vmatmul.msk.f32.vlgmr.msra.gmra.mxu1 %vm538_vm4, %v510_v24 }
 0x1e3   : > { %856 = vmatmul.msk.f32.vlgmr.msra.gmra.mxu2 %vm538_vm4, %v513_v25  ;;  %861 = vmatmul.msk.f32.vlgmr.msra.gmra.mxu3 %vm538_vm4, %v513_v25 }
 0x1ea   : > { %854 = vmatmul.msk.f32.gmra.mxu0 %vm538_vm4, %v511_v26  ;;  %859 = vmatmul.msk.f32.gmra.mxu1 %vm538_vm4, %v511_v26 }
 0x1f2   : > { %855 = vmatmul.msk.f32.gmra.mxu0 %vm538_vm4, %v512_v27  ;;  %860 = vmatmul.msk.f32.gmra.mxu1 %vm538_vm4, %v512_v27 }
 0x210   : > { %v526_v42 = vpop.permute.xlu2 %525 }
 0x25f   : > { %v574_v29 = vpop.f32.mrf.mxu0  ;;  %v603_v30 = vpop.f32.mrf.mxu1 }
 0x260   : > { %v1117_v31 = vadd.f32 %v574_v29, %v521_v28  ;;  %v1119_v32 = vadd.f32 %v603_v30, %v521_v28 }
 0x262   : > { %v1122_v33 = vmul.f32 0.70710677, %v1117_v31  ;;  %v1125_v34 = vmul.f32 0.70710677, %v1119_v32 }
 0x264   : > { %v631_v35 = vand.u32 2147483647, %v1122_v33  ;;  %v632_v36 = vand.u32 2147483647, %v1125_v34  ;;  %vm623_vm5 = vcmp.ge.f32.partialorder %v1122_v33, 0.0  ;;  %vm624_vm6 = vcmp.ge.f32.partialorder %v1125_v34, 0.0 }
 0x266   : > { %v635_v37 = vmul.f32 0.3275911, %v631_v35  ;;  %v636_v38 = vmul.f32 0.3275911, %v632_v36  ;;  %v683_v56 = vsub.f32 0.0, %v631_v35  ;;  %v684_v59 = vsub.f32 0.0, %v632_v36  ;;  %v583_v34 = vpop.f32.mrf.mxu2 }
 0x267   : > { %v577_v40 = vpop.f32.mrf.mxu0  ;;  %v606_v41 = vpop.f32.mrf.mxu1 }
 0x268   : > { %v639_v43 = vadd.f32 1.0, %v635_v37  ;;  %v640_v44 = vadd.f32 1.0, %v636_v38  ;;  %v1129_v45 = vadd.f32 %v577_v40, %v526_v42  ;;  %v1131_v46 = vadd.f32 %v606_v41, %v526_v42 }
 0x269   : > { %v687_v63 = vmul.f32 %v683_v56, %v631_v35  ;;  %v688_v2 = vmul.f32 %v684_v59, %v632_v36  ;;  %v942_v59 = vmov -1.0  }
 0x26a   : > { %907 = vrcp.f32 %v639_v43  ;;  %v1134_v47 = vmul.f32 0.70710677, %v1129_v45  ;;  %v1137_v49 = vmul.f32 0.70710677, %v1131_v46 }
 0x26b   : > { %909 = vrcp.f32 %v640_v44  ;;  %v691_v7 = vmul.f32 1.442695, %v687_v63  ;;  %v693_v11 = vmul.f32 1.442695, %v688_v2 }
 0x26c   : > { %v633_v50 = vand.u32 2147483647, %v1134_v47  ;;  %v634_v51 = vand.u32 2147483647, %v1137_v49  ;;  %vm625_vm7 = vcmp.ge.f32.partialorder %v1134_v47, 0.0  ;;  %vm626_vm8 = vcmp.ge.f32.partialorder %v1137_v49, 0.0 }
 0x26d   : > { %v617_v47 = vmul.f32 0.5, %v1129_v45  ;;  %v616_v49 = vmul.f32 0.5, %v1119_v32  ;;  %v723_v32 = vld [vmem:[%s1166_s4] sm:$0xf] }
 0x26e   : > { %v637_v52 = vmul.f32 0.3275911, %v633_v50  ;;  %v638_v54 = vmul.f32 0.3275911, %v634_v51  ;;  %v685_v8 = vsub.f32 0.0, %v633_v50  ;;  %v686_v12 = vsub.f32 0.0, %v634_v51 }
 0x270   : > { %v908_v53 = vpop.eup %907  ;;  %v641_v57 = vadd.f32 1.0, %v637_v52  ;;  %v642_v60 = vadd.f32 1.0, %v638_v54  ;;  %v689_v19 = vmul.f32 %v685_v8, %v633_v50  ;;  %v690_v21 = vmul.f32 %v686_v12, %v634_v51 }
 0x271   : > { %v910_v55 = vpop.eup %909  ;;  %v647_v58 = vmul.f32 1.0614054, %v908_v53 }
 0x272   : > { %v648_v61 = vmul.f32 1.0614054, %v910_v55  ;;  %911 = vrcp.f32 %v641_v57  ;;  %v695_v28 = vmul.f32 1.442695, %v689_v19  ;;  %v697_v35 = vmul.f32 1.442695, %v690_v21 }
 0x273   : > { %v651_v62 = vadd.f32 -1.4531521, %v647_v58  ;;  %913 = vrcp.f32 %v642_v60  ;;  %v627_v60 = vsel %vm623_vm5, 1.0, %v942_v59 }
 0x274   : > { %v652_v39 = vadd.f32 -1.4531521, %v648_v61  ;;  %915 = vpow2.f32 %v691_v7  ;;  %v630_v7 = vsel %vm626_vm8, 1.0, %v942_v59 }
 0x275   : > { %v655_v1 = vmul.f32 %v908_v53, %v651_v62  ;;  %917 = vpow2.f32 %v693_v11  ;;  %v536_v11 = vpop.permute.xlu1 %535 }
 0x276   : > { %v656_v3 = vmul.f32 %v910_v55, %v652_v39  ;;  %919 = vpow2.f32 %v695_v28  ;;  %v628_v39 = vsel %vm624_vm6, 1.0, %v942_v59 }
 0x277   : > { %v659_v4 = vadd.f32 1.4214138, %v655_v1  ;;  %921 = vpow2.f32 %v697_v35 }
 0x278   : > { %v660_v5 = vadd.f32 1.4214138, %v656_v3  ;;  %v912_v6 = vpop.eup %911 }
 0x279   : > { %v663_v9 = vmul.f32 %v908_v53, %v659_v4  ;;  %v914_v10 = vpop.eup %913  ;;  %v649_v13 = vmul.f32 1.0614054, %v912_v6  ;;  %v629_v4 = vsel %vm625_vm7, 1.0, %v942_v59 }
 0x27a   : > { %v664_v14 = vmul.f32 %v910_v55, %v660_v5  ;;  %v650_v15 = vmul.f32 1.0614054, %v914_v10  ;;  %v916_v38 = vpop.eup %915 }
 0x27b   : > { %v667_v16 = vadd.f32 -0.28449672, %v663_v9  ;;  %v653_v17 = vadd.f32 -1.4531521, %v649_v13  ;;  %v918_v41 = vpop.eup %917  ;;  %v615_v13 = vmul.f32 0.5, %v1117_v31 }
 0x27c   : > { %v668_v18 = vadd.f32 -0.28449672, %v664_v14  ;;  %v654_v48 = vadd.f32 -1.4531521, %v650_v15  ;;  %v920_v58 = vpop.eup %919  ;;  %v584_v14 = vadd.f32 %v583_v34, %v536_v11 }
 0x27d   : > { %v671_v20 = vmul.f32 %v908_v53, %v667_v16  ;;  %v657_v22 = vmul.f32 %v912_v6, %v653_v17  ;;  %v922_v62 = vpop.eup %921  ;;  %v618_v16 = vmul.f32 0.5, %v1131_v46  ;;  %v580_v17 = vpop.f32.mrf.mxu0 }
 0x27e   : > { %v672_v23 = vmul.f32 %v910_v55, %v668_v18  ;;  %v658_v24 = vmul.f32 %v914_v10, %v654_v48  ;;  %v609_v48 = vpop.f32.mrf.mxu1  ;;  %v728_v28 = vpop.permute.xlu1 %727 }
 0x27f   : > { %v675_v25 = vadd.f32 0.2548296, %v671_v20  ;;  %v661_v26 = vadd.f32 1.4214138, %v657_v22  ;;  %v531_v22 = vpop.permute.xlu2 %530 }
 0x280   : > { %v676_v27 = vadd.f32 0.2548296, %v672_v23  ;;  %v662_v29 = vadd.f32 1.4214138, %v658_v24  ;;  %v610_v31 = vadd.f32 %v609_v48, %v531_v22 }
 0x281   : > { %v679_v30 = vmul.f32 %v908_v53, %v675_v25  ;;  %v665_v36 = vmul.f32 %v912_v6, %v661_v26  ;;  %v581_v25 = vadd.f32 %v580_v17, %v531_v22 }
 0x282   : > { %v680_v37 = vmul.f32 %v910_v55, %v676_v27  ;;  %v666_v40 = vmul.f32 %v914_v10, %v662_v29 }
 0x283   : > { %v669_v42 = vadd.f32 -0.28449672, %v665_v36  ;;  %v699_v43 = vmul.f32 %v916_v38, %v679_v30 }
 0x284   : > { %v670_v44 = vadd.f32 -0.28449672, %v666_v40  ;;  %v700_v50 = vmul.f32 %v918_v41, %v680_v37 }
 0x285   : > { %v673_v51 = vmul.f32 %v912_v6, %v669_v42  ;;  %v703_v56 = vsub.f32 1.0, %v699_v43 }
 0x286   : > { %v674_v52 = vmul.f32 %v914_v10, %v670_v44  ;;  %v704_v57 = vsub.f32 1.0, %v700_v50 }
 0x287   : > { %v677_v54 = vadd.f32 0.2548296, %v673_v51  ;;  %v707_v1 = vmul.f32 %v703_v56, %v627_v60 }
 0x288   : > { %v678_v53 = vadd.f32 0.2548296, %v674_v52  ;;  %v708_v2 = vmul.f32 %v704_v57, %v628_v39 }
 0x289   : > { %v681_v55 = vmul.f32 %v912_v6, %v677_v54  ;;  %v612_v6 = vpop.f32.mrf.mxu3  ;;  %v711_v9 = vadd.f32 1.0, %v707_v1 }
 0x28a   : > { %v682_v61 = vmul.f32 %v914_v10, %v678_v53  ;;  %v712_v12 = vadd.f32 1.0, %v708_v2  ;;  %v613_v18 = vadd.f32 %v612_v6, %v536_v11 }
 0x28b   : > { %v701_v63 = vmul.f32 %v920_v58, %v681_v55  ;;  %v715_v21 = vmul.f32 %v711_v9, %v615_v13 }
 0x28c   : > { %v702_v33 = vmul.f32 %v922_v62, %v682_v61  ;;  %v716_v24 = vmul.f32 %v712_v12, %v616_v49 }
 0x28d   : > { %v705_v3 = vsub.f32 1.0, %v701_v63  ;;  %v719_v45 = vmul.f32 %v715_v21, %v581_v25 }
 0x28e   : > { %v706_v5 = vsub.f32 1.0, %v702_v33  ;;  %v720_v46 = vmul.f32 %v716_v24, %v610_v31 }
 0x28f   : > { %v709_v8 = vmul.f32 %v705_v3, %v629_v4 }
 0x290   : > { %v710_v10 = vmul.f32 %v706_v5, %v630_v7 }
 0x291   : > { %v713_v15 = vadd.f32 1.0, %v709_v8 }
 0x292   : > { %v714_v19 = vadd.f32 1.0, %v710_v10 }
 0x293   : > { %v717_v20 = vmul.f32 %v713_v15, %v617_v47 }
 0x294   : > { %v718_v23 = vmul.f32 %v714_v19, %v618_v16 }
 0x295   : > { %v721_v26 = vmul.f32 %v717_v20, %v584_v14 }
 0x296   : > { %v722_v27 = vmul.f32 %v718_v23, %v613_v18 }
 0x297   : > { %748 = vmatpush.msrb.mxu2 %v721_v26 }
 0x298   : > { %768 = vmatpush.msrb.mxu3 %v722_v27 }
 0x299   : > { %749 = vmatpush.msrb.mxu2 %v719_v45 }
 0x29a   : > { %769 = vmatpush.msrb.mxu3 %v720_v46  ;;  %862 = vmatmul.msk.f32.vlgmr.msrb.gmra.mxu2 %vm730_vm9, %v723_v32 }
 0x29b   : > { %863 = vmatmul.msk.f32.vlgmr.msrb.gmra.mxu3 %vm730_vm9, %v723_v32 }
 0x31d   : > { %v751_v29 = vpop.f32.mrf.mxu2 }
 0x31e   : > { %v771_v30 = vpop.f32.mrf.mxu3  ;;  %v752_v36 = vadd.f32 %v751_v29, %v728_v28 }
 0x31f   : > { %v772_v35 = vadd.f32 %v771_v30, %v728_v28 }
 0x321   : > { %v776_v37 = vrot.slane %v772_v35, 4 }
 0x323   : > { %v777_v38 = vsel %vm259_vm0, %v752_v36, %v776_v37 }
 0x324   : > { %v779_v40 = vadd.f32 %v777_v38, %v994_v0 }
 0x326   : > { %780 = vst [vmem:[%s251_s7] sm:$0xff] %v779_v40 }
 0x327 PF: > { %s16_s21 = sadd.s32 1, %s929_s21  }
 0x328   : > { %p13_p4 = scmp.ge.s32.totalorder %s16_s21, 4  }
 0x32a   :  { %15 = sbr.rel (!%p13_p4) target bundleno = 1 (0x1), region = 81 }

</bundles_post_ra>
